<compile_context>
chip_gen: v5e
topology: v5e:2x2
jax: 0.10.0
libtpu: 0.0.40
codegen_flags: <defaults>
</compile_context>

<pallas_src>
import functools
import math

import jax
import jax.numpy as jnp
import numpy as np
from jax import lax
from jax.experimental import pallas as pl
from jax.experimental.pallas import tpu as pltpu

LANE = 128
SUBLANE = 8


def _round_up(x, m):
    return ((x + m - 1) // m) * m


def _act_op(name):
    if name == 'ReLU':
        return ("relu",)
    if name == 'LeakyReLU':
        return ("leaky", 0.2)
    if name == 'Sigmoid':
        return ("sigmoid",)
    if name == 'Softmax':
        return ("softmax",)
    return ("identity",)


# ---------------------------------------------------------------------------
# Parameter / op-list construction — mirrors BackBone.__init__ exactly, then
# builds the padded / packed kernel-side parameter buffers.
# ---------------------------------------------------------------------------
def build_backbone(layers, batchnorm=False, activate='ReLU', out_activate='ReLU',
                   dropout=False, out_batchnorm=True, *, key):
    """Returns (ref_ops, k_ops, w_stack, vec_stack, f_max, out_features)."""
    at = _act_op(activate)
    out_at = _act_op(out_activate)

    # ---- module list exactly like the PyTorch __init__ -------------------
    net = []
    for i in range(1, len(layers)):
        key, sub = jax.random.split(key)
        fan_in, fan_out = layers[i - 1], layers[i]
        kw, kb = jax.random.split(sub)
        bound = 1.0 / math.sqrt(fan_in)            # PyTorch default Linear init
        w = jax.random.uniform(kw, (fan_in, fan_out), jnp.float32, -bound, bound)
        b = jax.random.uniform(kb, (fan_out,), jnp.float32, -bound, bound)
        net.append(("linear", w, b))
        if batchnorm:
            net.append(("bn", jnp.ones((fan_out,), jnp.float32),
                        jnp.zeros((fan_out,), jnp.float32)))
        net.append(at)
    net = net[:-2]                                  # same quirk as the reference
    if out_activate is not None:
        if out_batchnorm:
            net.append(("bn", jnp.ones((layers[-1],), jnp.float32),
                        jnp.zeros((layers[-1],), jnp.float32)))
        net.append(out_at)

    ref_ops = tuple(net)                            # full-precision, unpadded

    # ---- padded / packed kernel parameters --------------------------------
    widths = [layers[0]] + [m[1].shape[1] for m in net if m[0] == "linear"]
    f_max = _round_up(max(widths), LANE)

    weights, vecs, k_ops = [], [], []
    cur_width = layers[0]
    for j, m in enumerate(net):
        kind = m[0]
        if kind == "linear":
            w, b = m[1], m[2]
            wp = jnp.zeros((f_max, f_max), jnp.float32)
            wp = wp.at[:w.shape[0], :w.shape[1]].set(w)
            weights.append(wp.astype(jnp.bfloat16))
            followed_by_bn = (j + 1 < len(net)) and (net[j + 1][0] == "bn")
            bias_row = None
            if not followed_by_bn:
                # Bias before BatchNorm is algebraically dead; only keep it
                # when no BN follows this Linear.
                bias_row = len(vecs)
                vecs.append(jnp.zeros((f_max,), jnp.float32).at[:b.shape[0]].set(b))
            k_ops.append(("linear", len(weights) - 1, bias_row))
            cur_width = w.shape[1]
        elif kind == "bn":
            g, bt = m[1], m[2]
            g_row = len(vecs)
            vecs.append(jnp.zeros((f_max,), jnp.float32).at[:g.shape[0]].set(g))
            b_row = len(vecs)
            vecs.append(jnp.zeros((f_max,), jnp.float32).at[:bt.shape[0]].set(bt))
            k_ops.append(("bn", g_row, b_row))
        elif kind == "softmax":
            k_ops.append(("softmax", cur_width))    # need true width for masking
        elif kind == "leaky":
            k_ops.append(("leaky", m[1]))
        else:
            k_ops.append((kind,))                   # relu / sigmoid / identity

    w_stack = (jnp.stack(weights, axis=0) if weights
               else jnp.zeros((1, f_max, f_max), jnp.bfloat16))
    n_vec_pad = _round_up(max(len(vecs), 1), SUBLANE)
    vec_stack = jnp.zeros((n_vec_pad, f_max), jnp.float32)
    if vecs:
        vec_stack = vec_stack.at[:len(vecs)].set(jnp.stack(vecs, axis=0))

    return ref_ops, tuple(k_ops), w_stack, vec_stack, f_max, cur_width


# ---------------------------------------------------------------------------
# Pallas kernel: whole MLP forward in one invocation (everything fits in VMEM)
# ---------------------------------------------------------------------------
def _backbone_kernel(k_ops, b_true, x_ref, w_ref, vec_ref, out_ref):
    b_pad = x_ref.shape[0]
    h = x_ref[...].astype(jnp.float32)

    row_mask = None
    if b_pad != b_true:                      # static decision (trace time)
        rows = lax.broadcasted_iota(jnp.int32, (b_pad, 1), 0)
        row_mask = rows < b_true
    inv_b = 1.0 / float(b_true)

    for op in k_ops:
        kind = op[0]
        if kind == "linear":
            w = w_ref[op[1]]                                   # (F, F) bf16
            h = jnp.dot(h.astype(jnp.bfloat16), w,
                        preferred_element_type=jnp.float32)    # f32 MXU accum
            if op[2] is not None:                              # only if no BN follows
                h = h + vec_ref[pl.ds(op[2], 1), :]
        elif kind == "bn":
            g = vec_ref[pl.ds(op[1], 1), :]
            bt = vec_ref[pl.ds(op[2], 1), :]
            hm = h if row_mask is None else jnp.where(row_mask, h, 0.0)
            mean = jnp.sum(hm, axis=0, keepdims=True) * inv_b
            centered = h - mean                                # reused below
            c2 = centered * centered
            if row_mask is not None:
                c2 = jnp.where(row_mask, c2, 0.0)
            var = jnp.sum(c2, axis=0, keepdims=True) * inv_b   # biased (training)
            h = centered * lax.rsqrt(var + 1e-5) * g + bt
        elif kind == "relu":
            h = jnp.maximum(h, 0.0)
        elif kind == "leaky":
            h = jnp.where(h >= 0.0, h, op[1] * h)
        elif kind == "sigmoid":
            h = jax.nn.sigmoid(h)
        elif kind == "softmax":
            cols = lax.broadcasted_iota(jnp.int32, h.shape, 1)
            h = jnp.where(cols < op[1], h, -jnp.inf)           # mask padded lanes
            h = jax.nn.softmax(h, axis=1)
        # "identity": no-op
    out_ref[...] = h.astype(out_ref.dtype)


def backbone_forward(x, k_ops, w_stack, vec_stack, f_max, out_features):
    b = x.shape[0]
    b_pad = max(_round_up(b, SUBLANE), SUBLANE)
    xp = jnp.zeros((b_pad, f_max), jnp.float32).at[:b, :x.shape[1]].set(x)

    kernel = functools.partial(_backbone_kernel, k_ops, b)
    vmem = pl.BlockSpec(memory_space=pltpu.MemorySpace.VMEM)
    out = pl.pallas_call(
        kernel,
        out_shape=jax.ShapeDtypeStruct((b_pad, f_max), jnp.float32),  # lane-dense
        in_specs=[vmem, vmem, vmem],
        out_specs=vmem,
    )(xp, w_stack, vec_stack)
    return out[:b, :out_features]


# ---------------------------------------------------------------------------
# Pure-JAX reference: exact module semantics (bias kept everywhere, training
# BatchNorm).  Matmuls use the same bf16-in / f32-accumulate scheme as the
# kernel so the comparison isolates kernel correctness (incl. the dead-bias
# and lane-padding optimizations).
# ---------------------------------------------------------------------------
def backbone_ref(x, ref_ops):
    h = x.astype(jnp.float32)
    for op in ref_ops:
        kind = op[0]
        if kind == "linear":
            w, b = op[1], op[2]
            h = jnp.dot(h.astype(jnp.bfloat16), w.astype(jnp.bfloat16),
                        preferred_element_type=jnp.float32) + b
        elif kind == "bn":
            g, bt = op[1], op[2]
            mean = jnp.mean(h, axis=0, keepdims=True)
            var = jnp.mean(jnp.square(h - mean), axis=0, keepdims=True)
            h = (h - mean) * lax.rsqrt(var + 1e-5) * g + bt
        elif kind == "relu":
            h = jnp.maximum(h, 0.0)
        elif kind == "leaky":
            h = jnp.where(h >= 0.0, h, op[1] * h)
        elif kind == "sigmoid":
            h = jax.nn.sigmoid(h)
        elif kind == "softmax":
            h = jax.nn.softmax(h, axis=1)
    return h


if __name__ == "__main__":
    key = jax.random.PRNGKey(0)
    kp, kx = jax.random.split(key)

    # Small shapes consistent with the module's MLP usage.
    layers = [32, 64, 48, 48, 32]
    batch = 8

    ref_ops, k_ops, w_stack, vec_stack, f_max, out_features = build_backbone(
        layers, batchnorm=True, activate='ReLU', out_activate='ReLU',
        dropout=False, out_batchnorm=True, key=kp)

    x = jax.random.normal(kx, (batch, layers[0]), dtype=jnp.float32)

    ref = backbone_ref(x, ref_ops)
    out = backbone_forward(x, k_ops, w_stack, vec_stack, f_max, out_features)
    jax.block_until_ready(out)

    np.testing.assert_allclose(np.asarray(out), np.asarray(ref),
                               rtol=1e-2, atol=1e-2)
    print("KERNEL_OK")
</pallas_src>

<mosaic_0001>
module attributes {stable_mosaic.version = 11 : i64} {
  func.func @_backbone_kernel(%arg0: memref<8x128xf32, #tpu.memory_space<vmem>>, %arg1: memref<4x128x128xbf16, #tpu.memory_space<vmem>>, %arg2: memref<8x128xf32, #tpu.memory_space<vmem>>, %arg3: memref<8x128xf32, #tpu.memory_space<vmem>>) attributes {dimension_semantics = [], scalar_prefetch = 0 : i64, scratch_operands = 0 : i64, tpu.core_type = #tpu.core_type<tc>} {
    %c0 = arith.constant 0 : index
    %c0_0 = arith.constant 0 : index
    %0 = vector.load %arg0[%c0, %c0_0] : memref<8x128xf32, #tpu.memory_space<vmem>>, vector<8x128xf32>
    %c0_1 = arith.constant 0 : index
    %c0_2 = arith.constant 0 : index
    %c0_3 = arith.constant 0 : index
    %1 = vector.load %arg1[%c0_1, %c0_2, %c0_3] : memref<4x128x128xbf16, #tpu.memory_space<vmem>>, vector<1x128x128xbf16>
    %2 = vector.shape_cast %1 : vector<1x128x128xbf16> to vector<128x128xbf16>
    %3 = arith.truncf %0 : vector<8x128xf32> to vector<8x128xbf16>
    %cst = arith.constant dense<0.000000e+00> : vector<8x128xf32>
    %4 = tpu.matmul %3, %2, %cst {dimension_numbers = #tpu.dot_dimension_numbers<[1], [0], [0], [1], [0, 0, 1, 1], [], []>} : vector<8x128xbf16>, vector<128x128xbf16>, vector<8x128xf32> -> vector<8x128xf32>
    %c0_4 = arith.constant 0 : index
    %c0_5 = arith.constant 0 : index
    %5 = vector.load %arg2[%c0_4, %c0_5] : memref<8x128xf32, #tpu.memory_space<vmem>>, vector<1x128xf32>
    %c1 = arith.constant 1 : index
    %c0_6 = arith.constant 0 : index
    %6 = vector.load %arg2[%c1, %c0_6] : memref<8x128xf32, #tpu.memory_space<vmem>>, vector<1x128xf32>
    %cst_7 = arith.constant dense<0.000000e+00> : vector<128xf32>
    %7 = vector.multi_reduction <add>, %4, %cst_7 [0] : vector<8x128xf32> to vector<128xf32>
    %8 = vector.shape_cast %7 : vector<128xf32> to vector<1x128xf32>
    %cst_8 = arith.constant 1.250000e-01 : f32
    %9 = vector.broadcast %cst_8 : f32 to vector<1x128xf32>
    %10 = arith.mulf %8, %9 : vector<1x128xf32>
    %11 = vector.broadcast %10 : vector<1x128xf32> to vector<8x128xf32>
    %12 = arith.subf %4, %11 : vector<8x128xf32>
    %13 = arith.mulf %12, %12 : vector<8x128xf32>
    %cst_9 = arith.constant dense<0.000000e+00> : vector<128xf32>
    %14 = vector.multi_reduction <add>, %13, %cst_9 [0] : vector<8x128xf32> to vector<128xf32>
    %15 = vector.shape_cast %14 : vector<128xf32> to vector<1x128xf32>
    %cst_10 = arith.constant 1.250000e-01 : f32
    %16 = vector.broadcast %cst_10 : f32 to vector<1x128xf32>
    %17 = arith.mulf %15, %16 : vector<1x128xf32>
    %cst_11 = arith.constant 9.99999974E-6 : f32
    %18 = vector.broadcast %cst_11 : f32 to vector<1x128xf32>
    %19 = arith.addf %17, %18 : vector<1x128xf32>
    %20 = math.rsqrt %19 : vector<1x128xf32>
    %21 = vector.broadcast %20 : vector<1x128xf32> to vector<8x128xf32>
    %22 = arith.mulf %12, %21 : vector<8x128xf32>
    %23 = vector.broadcast %5 : vector<1x128xf32> to vector<8x128xf32>
    %24 = arith.mulf %22, %23 : vector<8x128xf32>
    %25 = vector.broadcast %6 : vector<1x128xf32> to vector<8x128xf32>
    %26 = arith.addf %24, %25 : vector<8x128xf32>
    %cst_12 = arith.constant 0.000000e+00 : f32
    %27 = vector.broadcast %cst_12 : f32 to vector<8x128xf32>
    %28 = arith.maximumf %26, %27 : vector<8x128xf32>
    %c1_13 = arith.constant 1 : index
    %c0_14 = arith.constant 0 : index
    %c0_15 = arith.constant 0 : index
    %29 = vector.load %arg1[%c1_13, %c0_14, %c0_15] : memref<4x128x128xbf16, #tpu.memory_space<vmem>>, vector<1x128x128xbf16>
    %30 = vector.shape_cast %29 : vector<1x128x128xbf16> to vector<128x128xbf16>
    %31 = arith.truncf %28 : vector<8x128xf32> to vector<8x128xbf16>
    %cst_16 = arith.constant dense<0.000000e+00> : vector<8x128xf32>
    %32 = tpu.matmul %31, %30, %cst_16 {dimension_numbers = #tpu.dot_dimension_numbers<[1], [0], [0], [1], [0, 0, 1, 1], [], []>} : vector<8x128xbf16>, vector<128x128xbf16>, vector<8x128xf32> -> vector<8x128xf32>
    %c2 = arith.constant 2 : index
    %c0_17 = arith.constant 0 : index
    %33 = vector.load %arg2[%c2, %c0_17] : memref<8x128xf32, #tpu.memory_space<vmem>>, vector<1x128xf32>
    %c3 = arith.constant 3 : index
    %c0_18 = arith.constant 0 : index
    %34 = vector.load %arg2[%c3, %c0_18] : memref<8x128xf32, #tpu.memory_space<vmem>>, vector<1x128xf32>
    %cst_19 = arith.constant dense<0.000000e+00> : vector<128xf32>
    %35 = vector.multi_reduction <add>, %32, %cst_19 [0] : vector<8x128xf32> to vector<128xf32>
    %36 = vector.shape_cast %35 : vector<128xf32> to vector<1x128xf32>
    %cst_20 = arith.constant 1.250000e-01 : f32
    %37 = vector.broadcast %cst_20 : f32 to vector<1x128xf32>
    %38 = arith.mulf %36, %37 : vector<1x128xf32>
    %39 = vector.broadcast %38 : vector<1x128xf32> to vector<8x128xf32>
    %40 = arith.subf %32, %39 : vector<8x128xf32>
    %41 = arith.mulf %40, %40 : vector<8x128xf32>
    %cst_21 = arith.constant dense<0.000000e+00> : vector<128xf32>
    %42 = vector.multi_reduction <add>, %41, %cst_21 [0] : vector<8x128xf32> to vector<128xf32>
    %43 = vector.shape_cast %42 : vector<128xf32> to vector<1x128xf32>
    %cst_22 = arith.constant 1.250000e-01 : f32
    %44 = vector.broadcast %cst_22 : f32 to vector<1x128xf32>
    %45 = arith.mulf %43, %44 : vector<1x128xf32>
    %cst_23 = arith.constant 9.99999974E-6 : f32
    %46 = vector.broadcast %cst_23 : f32 to vector<1x128xf32>
    %47 = arith.addf %45, %46 : vector<1x128xf32>
    %48 = math.rsqrt %47 : vector<1x128xf32>
    %49 = vector.broadcast %48 : vector<1x128xf32> to vector<8x128xf32>
    %50 = arith.mulf %40, %49 : vector<8x128xf32>
    %51 = vector.broadcast %33 : vector<1x128xf32> to vector<8x128xf32>
    %52 = arith.mulf %50, %51 : vector<8x128xf32>
    %53 = vector.broadcast %34 : vector<1x128xf32> to vector<8x128xf32>
    %54 = arith.addf %52, %53 : vector<8x128xf32>
    %cst_24 = arith.constant 0.000000e+00 : f32
    %55 = vector.broadcast %cst_24 : f32 to vector<8x128xf32>
    %56 = arith.maximumf %54, %55 : vector<8x128xf32>
    %c2_25 = arith.constant 2 : index
    %c0_26 = arith.constant 0 : index
    %c0_27 = arith.constant 0 : index
    %57 = vector.load %arg1[%c2_25, %c0_26, %c0_27] : memref<4x128x128xbf16, #tpu.memory_space<vmem>>, vector<1x128x128xbf16>
    %58 = vector.shape_cast %57 : vector<1x128x128xbf16> to vector<128x128xbf16>
    %59 = arith.truncf %56 : vector<8x128xf32> to vector<8x128xbf16>
    %cst_28 = arith.constant dense<0.000000e+00> : vector<8x128xf32>
    %60 = tpu.matmul %59, %58, %cst_28 {dimension_numbers = #tpu.dot_dimension_numbers<[1], [0], [0], [1], [0, 0, 1, 1], [], []>} : vector<8x128xbf16>, vector<128x128xbf16>, vector<8x128xf32> -> vector<8x128xf32>
    %c4 = arith.constant 4 : index
    %c0_29 = arith.constant 0 : index
    %61 = vector.load %arg2[%c4, %c0_29] : memref<8x128xf32, #tpu.memory_space<vmem>>, vector<1x128xf32>
    %c5 = arith.constant 5 : index
    %c0_30 = arith.constant 0 : index
    %62 = vector.load %arg2[%c5, %c0_30] : memref<8x128xf32, #tpu.memory_space<vmem>>, vector<1x128xf32>
    %cst_31 = arith.constant dense<0.000000e+00> : vector<128xf32>
    %63 = vector.multi_reduction <add>, %60, %cst_31 [0] : vector<8x128xf32> to vector<128xf32>
    %64 = vector.shape_cast %63 : vector<128xf32> to vector<1x128xf32>
    %cst_32 = arith.constant 1.250000e-01 : f32
    %65 = vector.broadcast %cst_32 : f32 to vector<1x128xf32>
    %66 = arith.mulf %64, %65 : vector<1x128xf32>
    %67 = vector.broadcast %66 : vector<1x128xf32> to vector<8x128xf32>
    %68 = arith.subf %60, %67 : vector<8x128xf32>
    %69 = arith.mulf %68, %68 : vector<8x128xf32>
    %cst_33 = arith.constant dense<0.000000e+00> : vector<128xf32>
    %70 = vector.multi_reduction <add>, %69, %cst_33 [0] : vector<8x128xf32> to vector<128xf32>
    %71 = vector.shape_cast %70 : vector<128xf32> to vector<1x128xf32>
    %cst_34 = arith.constant 1.250000e-01 : f32
    %72 = vector.broadcast %cst_34 : f32 to vector<1x128xf32>
    %73 = arith.mulf %71, %72 : vector<1x128xf32>
    %cst_35 = arith.constant 9.99999974E-6 : f32
    %74 = vector.broadcast %cst_35 : f32 to vector<1x128xf32>
    %75 = arith.addf %73, %74 : vector<1x128xf32>
    %76 = math.rsqrt %75 : vector<1x128xf32>
    %77 = vector.broadcast %76 : vector<1x128xf32> to vector<8x128xf32>
    %78 = arith.mulf %68, %77 : vector<8x128xf32>
    %79 = vector.broadcast %61 : vector<1x128xf32> to vector<8x128xf32>
    %80 = arith.mulf %78, %79 : vector<8x128xf32>
    %81 = vector.broadcast %62 : vector<1x128xf32> to vector<8x128xf32>
    %82 = arith.addf %80, %81 : vector<8x128xf32>
    %cst_36 = arith.constant 0.000000e+00 : f32
    %83 = vector.broadcast %cst_36 : f32 to vector<8x128xf32>
    %84 = arith.maximumf %82, %83 : vector<8x128xf32>
    %c3_37 = arith.constant 3 : index
    %c0_38 = arith.constant 0 : index
    %c0_39 = arith.constant 0 : index
    %85 = vector.load %arg1[%c3_37, %c0_38, %c0_39] : memref<4x128x128xbf16, #tpu.memory_space<vmem>>, vector<1x128x128xbf16>
    %86 = vector.shape_cast %85 : vector<1x128x128xbf16> to vector<128x128xbf16>
    %87 = arith.truncf %84 : vector<8x128xf32> to vector<8x128xbf16>
    %cst_40 = arith.constant dense<0.000000e+00> : vector<8x128xf32>
    %88 = tpu.matmul %87, %86, %cst_40 {dimension_numbers = #tpu.dot_dimension_numbers<[1], [0], [0], [1], [0, 0, 1, 1], [], []>} : vector<8x128xbf16>, vector<128x128xbf16>, vector<8x128xf32> -> vector<8x128xf32>
    %c6 = arith.constant 6 : index
    %c0_41 = arith.constant 0 : index
    %89 = vector.load %arg2[%c6, %c0_41] : memref<8x128xf32, #tpu.memory_space<vmem>>, vector<1x128xf32>
    %c7 = arith.constant 7 : index
    %c0_42 = arith.constant 0 : index
    %90 = vector.load %arg2[%c7, %c0_42] : memref<8x128xf32, #tpu.memory_space<vmem>>, vector<1x128xf32>
    %cst_43 = arith.constant dense<0.000000e+00> : vector<128xf32>
    %91 = vector.multi_reduction <add>, %88, %cst_43 [0] : vector<8x128xf32> to vector<128xf32>
    %92 = vector.shape_cast %91 : vector<128xf32> to vector<1x128xf32>
    %cst_44 = arith.constant 1.250000e-01 : f32
    %93 = vector.broadcast %cst_44 : f32 to vector<1x128xf32>
    %94 = arith.mulf %92, %93 : vector<1x128xf32>
    %95 = vector.broadcast %94 : vector<1x128xf32> to vector<8x128xf32>
    %96 = arith.subf %88, %95 : vector<8x128xf32>
    %97 = arith.mulf %96, %96 : vector<8x128xf32>
    %cst_45 = arith.constant dense<0.000000e+00> : vector<128xf32>
    %98 = vector.multi_reduction <add>, %97, %cst_45 [0] : vector<8x128xf32> to vector<128xf32>
    %99 = vector.shape_cast %98 : vector<128xf32> to vector<1x128xf32>
    %cst_46 = arith.constant 1.250000e-01 : f32
    %100 = vector.broadcast %cst_46 : f32 to vector<1x128xf32>
    %101 = arith.mulf %99, %100 : vector<1x128xf32>
    %cst_47 = arith.constant 9.99999974E-6 : f32
    %102 = vector.broadcast %cst_47 : f32 to vector<1x128xf32>
    %103 = arith.addf %101, %102 : vector<1x128xf32>
    %104 = math.rsqrt %103 : vector<1x128xf32>
    %105 = vector.broadcast %104 : vector<1x128xf32> to vector<8x128xf32>
    %106 = arith.mulf %96, %105 : vector<8x128xf32>
    %107 = vector.broadcast %89 : vector<1x128xf32> to vector<8x128xf32>
    %108 = arith.mulf %106, %107 : vector<8x128xf32>
    %109 = vector.broadcast %90 : vector<1x128xf32> to vector<8x128xf32>
    %110 = arith.addf %108, %109 : vector<8x128xf32>
    %cst_48 = arith.constant 0.000000e+00 : f32
    %111 = vector.broadcast %cst_48 : f32 to vector<8x128xf32>
    %112 = arith.maximumf %110, %111 : vector<8x128xf32>
    %c0_49 = arith.constant 0 : index
    %c0_50 = arith.constant 0 : index
    %113 = vector.load %arg3[%c0_49, %c0_50] : memref<8x128xf32, #tpu.memory_space<vmem>>, vector<8x128xf32>
    tpu.vector_store %arg3[%c0_49, %c0_50], %112 {strides = array<i32>} : memref<8x128xf32, #tpu.memory_space<vmem>>, vector<8x128xf32>,
    return
  }
}

</mosaic_0001>

<bundles_post_ra>
// kernel: tpu_custom_call.1
= control target key start
LH: loop header
LB: loop body
LE: loop exit
PB: predicated region body
PF: predicated region fallthrough
CT: control target
= control target key end

     0   :  { %8 = vsyncpa [#allocation3], 0  ;;  %s855_s0 = inlined_call_operand.hbm [shape: f32[8,128], index: 0, kind: input, shape index: {}]   ;;  %s856_s1 = inlined_call_operand.hbm [shape: bf16[4,128,128], index: 1, kind: input, shape index: {}]   ;;  %s857_s2 = inlined_call_operand.hbm [shape: f32[8,128], index: 2, kind: input, shape index: {}]   ;;  %s858_s3 = inlined_call_operand.hbm [shape: f32[8,128], index: 3, kind: output, shape index: {}]  }
   0x1   :  { %9 = vsyncpa [#allocation6], 0  ;;  %s26_s14 = sshll.u32 %s856_s1, 4  ;;  %s27_s14 = int_to_ptr.hbm [resolvable:$true] %s26_s14 }
   0x2   :  { %10 = vsyncpa [#allocation4], 0  ;;  %s817_s15 = smov [#allocation5]   ;;  %s16_s19 = sshll.u32 %s855_s0, 4  ;;  %s17_s19 = int_to_ptr.hbm [resolvable:$true] %s16_s19 }
   0x3   :  { %s28_s16 = sshll.u32 %s817_s15, 4  ;;  %s818_s20 = smov 64   ;;  %s29_s16 = int_to_ptr.vmem [resolvable:$true] %s28_s16 }
   0x4   :  { %s819_s21 = smov 4   ;;  %s820_s22 = smov [#allocation2]  }
   0x5   :  { %34 = dma.hbm_to_vmem [thread:$0]  %s27_s14, 4096, %s29_s16, [#allocation6], %s818_s20, %s818_s20, %s819_s21  }
   0x6   :  { %s18_s23 = sshll.u32 %s820_s22, 4  ;;  %s40_s26 = sshll.u32 %s857_s2, 4  ;;  %s19_s23 = int_to_ptr.vmem [resolvable:$true] %s18_s23  ;;  %s41_s26 = int_to_ptr.hbm [resolvable:$true] %s40_s26 }
   0x7   :  { %21 = dma.hbm_to_vmem [thread:$0]  %s17_s19, 128, %s19_s23, [#allocation3]  }
   0x8   :  { %s821_s1 = smov [#allocation7]  }
   0x9   :  { %s42_s27 = sshll.u32 %s821_s1, 4  ;;  %s43_s27 = int_to_ptr.vmem [resolvable:$true] %s42_s27 }
   0xa   :  { %45 = dma.hbm_to_vmem [thread:$0]  %s41_s26, 128, %s43_s27, [#allocation6]  }
   0xb   :  { %811 = dma.done.wait [#allocation3], 128  }
   0xc   :  { %812 = vsyncadd [#allocation3], 4294967168 }
   0xd   :  { %813 = dma.done.wait [#allocation6], 4224  }
   0xe   :  { %814 = vsyncadd [#allocation6], 4294963072  ;;  %v668_v0 = vld [vmem:[#allocation5 + $0x38] sm:$0xff]  ;;  %v667_v1 = vld [vmem:[#allocation5 + $0x30] sm:$0xff]  ;;  %s822_s0 = smov [#allocation8]   ;;  %s522_s30 = sshll.u32 %s858_s3, 4  ;;  %s523_s30 = int_to_ptr.hbm [resolvable:$true] %s522_s30 }
   0xf   :  { %124 = vmatpush.bf16.msra.mxu0 %v668_v0  ;;  %v666_v2 = vld [vmem:[#allocation5 + $0x28] sm:$0xff]  ;;  %v665_v3 = vld [vmem:[#allocation5 + $0x20] sm:$0xff]  ;;  %v664_v4 = vld [vmem:[#allocation5 + $0x18] sm:$0xff]  ;;  %s520_s2 = sshll.u32 %s822_s0, 4  ;;  %s521_s2 = int_to_ptr.vmem [resolvable:$true] %s520_s2 }
  0x10   :  { %v663_v5 = vld [vmem:[#allocation5 + $0x10] sm:$0xff]  ;;  %v662_v6 = vld [vmem:[#allocation5 + $0x8] sm:$0xff]  ;;  %v661_v7 = vld [vmem:[#allocation5] sm:$0xff] }
  0x11   :  { %v58_v8 = vld [vmem:[#allocation2] sm:$0xff]  ;;  %v675_v13 = vld [vmem:[#allocation5 + $0x70] sm:$0xff]  ;;  %v674_v16 = vld [vmem:[#allocation5 + $0x68] sm:$0xff] }
  0x12   :  { %v75_v9 = vpack.c.bf16 %v58_v8, %v58_v8  ;;  %v676_v10 = vld [vmem:[#allocation5 + $0x78] sm:$0xff]  ;;  %v673_v20 = vld [vmem:[#allocation5 + $0x60] sm:$0xff]  ;;  %v671_v26 = vld [vmem:[#allocation5 + $0x50] sm:$0xff] }
  0x13   :  { %125 = vmatpush.bf16.msra.mxu0 %v667_v1  ;;  %238 = vmatpush.bf16.msra.mxu1 %v676_v10  ;;  %v672_v23 = vld [vmem:[#allocation5 + $0x58] sm:$0xff]  ;;  %v670_v29 = vld [vmem:[#allocation5 + $0x48] sm:$0xff]  ;;  %v669_v31 = vld [vmem:[#allocation5 + $0x40] sm:$0xff] }
  0x14   :  { %v699_v43 = vld [vmem:[#allocation7] ss:$0 sm:$0xff]  ;;  %v700_v46 = vld [vmem:[#allocation7 + $0x1] ss:$0 sm:$0xff]  ;;  %v684_v51 = vld [vmem:[#allocation5 + $0xb8] sm:$0xff] }
  0x15   :  { %352 = vmatpush.bf16.msra.mxu2 %v684_v51  ;;  %v683_v54 = vld [vmem:[#allocation5 + $0xb0] sm:$0xff]  ;;  %v682_v57 = vld [vmem:[#allocation5 + $0xa8] sm:$0xff]  ;;  %v681_v61 = vld [vmem:[#allocation5 + $0xa0] sm:$0xff] }
  0x16   :  { %v680_v0 = vld [vmem:[#allocation5 + $0x98] sm:$0xff]  ;;  %v677_v8 = vld [vmem:[#allocation5 + $0x80] sm:$0xff] }
  0x17   :  { %126 = vmatpush.bf16.msra.mxu0 %v666_v2  ;;  %239 = vmatpush.bf16.msra.mxu1 %v675_v13 }
  0x19   :  { %353 = vmatpush.bf16.msra.mxu2 %v683_v54 }
  0x1b   :  { %127 = vmatpush.bf16.msra.mxu0 %v665_v3  ;;  %240 = vmatpush.bf16.msra.mxu1 %v674_v16  ;;  %v679_v3 = vld [vmem:[#allocation5 + $0x90] sm:$0xff] }
  0x1d   :  { %354 = vmatpush.bf16.msra.mxu2 %v682_v57 }
  0x1f   :  { %128 = vmatpush.bf16.msra.mxu0 %v664_v4  ;;  %241 = vmatpush.bf16.msra.mxu1 %v673_v20  ;;  %v701_v20 = vld [vmem:[#allocation7 + $0x2] ss:$0 sm:$0xff] }
  0x21   :  { %355 = vmatpush.bf16.msra.mxu2 %v681_v61  ;;  %v703_v61 = vld [vmem:[#allocation7 + $0x4] ss:$0 sm:$0xff] }
  0x23   :  { %129 = vmatpush.bf16.msra.mxu0 %v663_v5  ;;  %242 = vmatpush.bf16.msra.mxu1 %v672_v23  ;;  %v702_v23 = vld [vmem:[#allocation7 + $0x3] ss:$0 sm:$0xff] }
  0x25   :  { %356 = vmatpush.bf16.msra.mxu2 %v680_v0  ;;  %v704_v0 = vld [vmem:[#allocation7 + $0x5] ss:$0 sm:$0xff] }
  0x27   :  { %130 = vmatpush.bf16.msra.mxu0 %v662_v6  ;;  %243 = vmatpush.bf16.msra.mxu1 %v671_v26  ;;  %v678_v6 = vld [vmem:[#allocation5 + $0x88] sm:$0xff] }
  0x29   :  { %357 = vmatpush.bf16.msra.mxu2 %v679_v3 }
  0x2b   :  { %131 = vmatpush.bf16.msra.mxu0 %v661_v7  ;;  %244 = vmatpush.bf16.msra.mxu1 %v670_v29 }
  0x2d   :  { %358 = vmatpush.bf16.msra.mxu2 %v678_v6 }
  0x2e   :  { %132 = vmatmul.bf16.vlgmr.msra.gmra.mxu0 %v75_v9 }
  0x2f   :  { %245 = vmatpush.bf16.msra.mxu1 %v669_v31  ;;  %v691_v31 = vld [vmem:[#allocation5 + $0xf0] sm:$0xff] }
  0x31   :  { %359 = vmatpush.bf16.msra.mxu2 %v677_v8 }
  0xab   :  { %v133_v11 = vpop.f32.mrf.mxu0 }
  0xac   :  { %v139_v12 = vrot.slane %v133_v11, 4 }
  0xae   :  { %v140_v14 = vadd.f32 %v139_v12, %v133_v11 }
  0xb0   :  { %v141_v15 = vrot.slane %v140_v14, 2 }
  0xb2   :  { %v142_v17 = vadd.f32 %v141_v15, %v140_v14 }
  0xb3   :  { %v135_v18 = vpop.f32.mrf.mxu0 }
  0xb4   :  { %v143_v19 = vrot.slane %v142_v17, 1 }
  0xb6   :  { %v144_v21 = vadd.f32 %v143_v19, %v142_v17 }
  0xb8   :  { %v145_v22 = vmul.f32 0.125, %v144_v21 }
  0xba   :  { %v146_v24 = vsub.f32 %v133_v11, %v145_v22 }
  0xbc   :  { %v147_v25 = vmul.f32 %v146_v24, %v146_v24 }
  0xbe   :  { %v148_v27 = vrot.slane %v147_v25, 4 }
  0xc0   :  { %v149_v28 = vadd.f32 %v148_v27, %v147_v25 }
  0xc2   :  { %v150_v30 = vrot.slane %v149_v28, 2 }
  0xc4   :  { %v151_v32 = vadd.f32 %v150_v30, %v149_v28  ;;  %v692_v28 = vld [vmem:[#allocation5 + $0xf8] sm:$0xff] }
  0xc5   :  { %466 = vmatpush.bf16.msra.mxu3 %v692_v28 }
  0xc6   :  { %v152_v33 = vrot.slane %v151_v32, 1 }
  0xc8   :  { %v153_v34 = vadd.f32 %v152_v33, %v151_v32 }
  0xc9   :  { %467 = vmatpush.bf16.msra.mxu3 %v691_v31 }
  0xca   :  { %v154_v35 = vmul.f32 0.125, %v153_v34  ;;  %v690_v34 = vld [vmem:[#allocation5 + $0xe8] sm:$0xff] }
  0xcc   :  { %v155_v36 = vadd.f32 1e-05, %v154_v35 }
  0xcd   :  { %468 = vmatpush.bf16.msra.mxu3 %v690_v34 }
  0xce   :  { %707 = vrsqrt.f32 %v155_v36  ;;  %vm162_vm1 = vweird.f32 %v155_v36 }
  0xd4   :  { %v708_v37 = vpop.eup %707 }
  0xd5   :  { %v157_v38 = vmul.f32 %v708_v37, %v155_v36  ;;  %vm163_vm0 = vweird.f32 %v708_v37 }
  0xd6   :  { %vm164_vm2 = vmor %vm162_vm1, %vm163_vm0 }
  0xd7   :  { %v158_v39 = vmul.f32 %v708_v37, %v157_v38  ;;  %v689_v38 = vld [vmem:[#allocation5 + $0xe0] sm:$0xff] }
  0xd8   :  { %469 = vmatpush.bf16.msra.mxu3 %v689_v38 }
  0xd9   :  { %v159_v40 = vmul.f32 0.5, %v158_v39 }
  0xdb   :  { %v160_v41 = vsub.f32 1.5, %v159_v40 }
  0xdd   :  { %v161_v42 = vmul.f32 %v708_v37, %v160_v41  ;;  %v688_v41 = vld [vmem:[#allocation5 + $0xd8] sm:$0xff] }
  0xde   :  { %470 = vmatpush.bf16.msra.mxu3 %v688_v41 }
  0xdf   :  { %v165_v44 = vsel %vm164_vm2, %v708_v37, %v161_v42 }
  0xe0   :  { %v166_v45 = vmul.f32 %v165_v44, %v146_v24  ;;  %v687_v44 = vld [vmem:[#allocation5 + $0xd0] sm:$0xff] }
  0xe2   :  { %v168_v47 = vmul.f32 %v699_v43, %v166_v45  ;;  %471 = vmatpush.bf16.msra.mxu3 %v687_v44 }
  0xe4   :  { %v170_v48 = vadd.f32 %v700_v46, %v168_v47  ;;  %v686_v47 = vld [vmem:[#allocation5 + $0xc8] sm:$0xff] }
  0xe6   :  { %v171_v49 = vmax.f32 %v170_v48, 0.0  ;;  %472 = vmatpush.bf16.msra.mxu3 %v686_v47 }
  0xe8   :  { %v189_v50 = vpack.c.bf16 %v171_v49, %v171_v49  ;;  %v685_v49 = vld [vmem:[#allocation5 + $0xc0] sm:$0xff] }
  0xea   :  { %246 = vmatmul.bf16.vlgmr.msra.gmra.mxu1 %v189_v50  ;;  %473 = vmatpush.bf16.msra.mxu3 %v685_v49 }
 0x167   :  { %v247_v52 = vpop.f32.mrf.mxu1 }
 0x168   :  { %v253_v53 = vrot.slane %v247_v52, 4 }
 0x16a   :  { %v254_v55 = vadd.f32 %v253_v53, %v247_v52 }
 0x16c   :  { %v255_v56 = vrot.slane %v254_v55, 2 }
 0x16e   :  { %v256_v58 = vadd.f32 %v255_v56, %v254_v55 }
 0x16f   :  { %v249_v59 = vpop.f32.mrf.mxu1 }
 0x170   :  { %v257_v60 = vrot.slane %v256_v58, 1 }
 0x172   :  { %v258_v62 = vadd.f32 %v257_v60, %v256_v58 }
 0x174   :  { %v259_v63 = vmul.f32 0.125, %v258_v62 }
 0x176   :  { %v260_v1 = vsub.f32 %v247_v52, %v259_v63 }
 0x178   :  { %v261_v2 = vmul.f32 %v260_v1, %v260_v1 }
 0x17a   :  { %v262_v4 = vrot.slane %v261_v2, 4 }
 0x17c   :  { %v263_v5 = vadd.f32 %v262_v4, %v261_v2 }
 0x17e   :  { %v264_v7 = vrot.slane %v263_v5, 2 }
 0x180   :  { %v265_v9 = vadd.f32 %v264_v7, %v263_v5 }
 0x182   :  { %v266_v10 = vrot.slane %v265_v9, 1 }
 0x184   :  { %v267_v11 = vadd.f32 %v266_v10, %v265_v9 }
 0x186   :  { %v268_v12 = vmul.f32 0.125, %v267_v11 }
 0x188   :  { %v269_v13 = vadd.f32 1e-05, %v268_v12 }
 0x18a   :  { %709 = vrsqrt.f32 %v269_v13  ;;  %vm276_vm4 = vweird.f32 %v269_v13 }
 0x190   :  { %v710_v14 = vpop.eup %709 }
 0x191   :  { %v271_v15 = vmul.f32 %v710_v14, %v269_v13  ;;  %vm277_vm3 = vweird.f32 %v710_v14 }
 0x192   :  { %vm278_vm5 = vmor %vm276_vm4, %vm277_vm3 }
 0x193   :  { %v272_v16 = vmul.f32 %v710_v14, %v271_v15 }
 0x195   :  { %v273_v17 = vmul.f32 0.5, %v272_v16 }
 0x197   :  { %v274_v18 = vsub.f32 1.5, %v273_v17 }
 0x199   :  { %v275_v19 = vmul.f32 %v710_v14, %v274_v18 }
 0x19b   :  { %v279_v21 = vsel %vm278_vm5, %v710_v14, %v275_v19 }
 0x19c   :  { %v280_v22 = vmul.f32 %v279_v21, %v260_v1 }
 0x19e   :  { %v282_v24 = vmul.f32 %v701_v20, %v280_v22 }
 0x1a0   :  { %v284_v25 = vadd.f32 %v702_v23, %v282_v24 }
 0x1a2   :  { %v285_v26 = vmax.f32 %v284_v25, 0.0 }
 0x1a4   :  { %v303_v27 = vpack.c.bf16 %v285_v26, %v285_v26 }
 0x1a6   :  { %360 = vmatmul.bf16.vlgmr.msra.gmra.mxu2 %v303_v27 }
 0x229   :  { %v361_v29 = vpop.f32.mrf.mxu2 }
 0x22a   :  { %v367_v30 = vrot.slane %v361_v29, 4 }
 0x22c   :  { %v368_v32 = vadd.f32 %v367_v30, %v361_v29  ;;  %v705_v30 = vld [vmem:[#allocation7 + $0x6] ss:$0 sm:$0xff] }
 0x22e   :  { %v369_v33 = vrot.slane %v368_v32, 2 }
 0x230   :  { %v370_v35 = vadd.f32 %v369_v33, %v368_v32  ;;  %v706_v33 = vld [vmem:[#allocation7 + $0x7] ss:$0 sm:$0xff] }
 0x231   :  { %v363_v36 = vpop.f32.mrf.mxu2 }
 0x232   :  { %v371_v37 = vrot.slane %v370_v35, 1 }
 0x234   :  { %v372_v39 = vadd.f32 %v371_v37, %v370_v35 }
 0x236   :  { %v373_v40 = vmul.f32 0.125, %v372_v39 }
 0x238   :  { %v374_v42 = vsub.f32 %v361_v29, %v373_v40 }
 0x23a   :  { %v375_v43 = vmul.f32 %v374_v42, %v374_v42 }
 0x23c   :  { %v376_v45 = vrot.slane %v375_v43, 4 }
 0x23e   :  { %v377_v46 = vadd.f32 %v376_v45, %v375_v43 }
 0x240   :  { %v378_v48 = vrot.slane %v377_v46, 2 }
 0x242   :  { %v379_v50 = vadd.f32 %v378_v48, %v377_v46 }
 0x244   :  { %v380_v51 = vrot.slane %v379_v50, 1 }
 0x246   :  { %v381_v52 = vadd.f32 %v380_v51, %v379_v50 }
 0x248   :  { %v382_v53 = vmul.f32 0.125, %v381_v52 }
 0x24a   :  { %v383_v54 = vadd.f32 1e-05, %v382_v53 }
 0x24c   :  { %711 = vrsqrt.f32 %v383_v54  ;;  %vm390_vm7 = vweird.f32 %v383_v54 }
 0x252   :  { %v712_v55 = vpop.eup %711 }
 0x253   :  { %v385_v56 = vmul.f32 %v712_v55, %v383_v54  ;;  %vm391_vm6 = vweird.f32 %v712_v55 }
 0x254   :  { %vm392_vm8 = vmor %vm390_vm7, %vm391_vm6 }
 0x255   :  { %v386_v57 = vmul.f32 %v712_v55, %v385_v56 }
 0x257   :  { %v387_v58 = vmul.f32 0.5, %v386_v57 }
 0x259   :  { %v388_v59 = vsub.f32 1.5, %v387_v58 }
 0x25b   :  { %v389_v60 = vmul.f32 %v712_v55, %v388_v59 }
 0x25d   :  { %v393_v62 = vsel %vm392_vm8, %v712_v55, %v389_v60 }
 0x25e   :  { %v394_v63 = vmul.f32 %v393_v62, %v374_v42 }
 0x260   :  { %v396_v1 = vmul.f32 %v703_v61, %v394_v63 }
 0x262   :  { %v398_v2 = vadd.f32 %v704_v0, %v396_v1 }
 0x264   :  { %v399_v3 = vmax.f32 %v398_v2, 0.0 }
 0x266   :  { %v417_v4 = vpack.c.bf16 %v399_v3, %v399_v3 }
 0x268   :  { %474 = vmatmul.bf16.vlgmr.msra.gmra.mxu3 %v417_v4 }
 0x2eb   :  { %v475_v5 = vpop.f32.mrf.mxu3 }
 0x2ec   :  { %v481_v6 = vrot.slane %v475_v5, 4 }
 0x2ee   :  { %v482_v7 = vadd.f32 %v481_v6, %v475_v5 }
 0x2f0   :  { %v483_v8 = vrot.slane %v482_v7, 2 }
 0x2f2   :  { %v484_v9 = vadd.f32 %v483_v8, %v482_v7 }
 0x2f3   :  { %v477_v10 = vpop.f32.mrf.mxu3 }
 0x2f4   :  { %v485_v11 = vrot.slane %v484_v9, 1 }
 0x2f6   :  { %v486_v12 = vadd.f32 %v485_v11, %v484_v9 }
 0x2f8   :  { %v487_v13 = vmul.f32 0.125, %v486_v12 }
 0x2fa   :  { %v488_v14 = vsub.f32 %v475_v5, %v487_v13 }
 0x2fc   :  { %v489_v15 = vmul.f32 %v488_v14, %v488_v14 }
 0x2fe   :  { %v490_v16 = vrot.slane %v489_v15, 4 }
 0x300   :  { %v491_v17 = vadd.f32 %v490_v16, %v489_v15 }
 0x302   :  { %v492_v18 = vrot.slane %v491_v17, 2 }
 0x304   :  { %v493_v19 = vadd.f32 %v492_v18, %v491_v17 }
 0x306   :  { %v494_v20 = vrot.slane %v493_v19, 1 }
 0x308   :  { %v495_v21 = vadd.f32 %v494_v20, %v493_v19 }
 0x30a   :  { %v496_v22 = vmul.f32 0.125, %v495_v21 }
 0x30c   :  { %v497_v23 = vadd.f32 1e-05, %v496_v22 }
 0x30e   :  { %713 = vrsqrt.f32 %v497_v23  ;;  %vm504_vm10 = vweird.f32 %v497_v23 }
 0x314   :  { %v714_v24 = vpop.eup %713 }
 0x315   :  { %v499_v25 = vmul.f32 %v714_v24, %v497_v23  ;;  %vm505_vm9 = vweird.f32 %v714_v24 }
 0x316   :  { %vm506_vm11 = vmor %vm504_vm10, %vm505_vm9 }
 0x317   :  { %v500_v26 = vmul.f32 %v714_v24, %v499_v25 }
 0x319   :  { %v501_v27 = vmul.f32 0.5, %v500_v26 }
 0x31b   :  { %v502_v28 = vsub.f32 1.5, %v501_v27 }
 0x31d   :  { %v503_v29 = vmul.f32 %v714_v24, %v502_v28 }
 0x31f   :  { %v507_v31 = vsel %vm506_vm11, %v714_v24, %v503_v29 }
 0x320   :  { %v508_v32 = vmul.f32 %v507_v31, %v488_v14 }
 0x322   :  { %v510_v34 = vmul.f32 %v705_v30, %v508_v32 }
 0x324   :  { %v512_v35 = vadd.f32 %v706_v33, %v510_v34 }
 0x326   :  { %v513_v36 = vmax.f32 %v512_v35, 0.0 }
 0x328   :  { %514 = vst [vmem:[#allocation8] sm:$0xff] %v513_v36 }
 0x329   :  { %525 = dma.vmem_to_hbm [thread:$0]  %s521_s2, 128, %s523_s30, [#allocation4]  }
 0x32a   :  { %815 = dma.done.wait [#allocation4], 128  }
 0x32b   :  { %816 = vsyncadd [#allocation4], 4294967168 }
 0x32c   :  { %530 = vsyncpa [#allocation3], 1 }
 0x32d   :  { %531 = vsyncpa [#allocation6], 1 }
 0x32e   :  { %532 = vsyncpa [#allocation4], 1 }

</bundles_post_ra>
